<compile_context>
chip_gen: v7x
topology: tpu7x:2x2x1
jax: 0.10.0
libtpu: 0.0.40
codegen_flags: <defaults>
</compile_context>

<pallas_src>
import jax
import jax.numpy as jnp
from jax.experimental import pallas as pl
from jax.experimental.pallas import tpu as pltpu

HIDDEN = 64
DEFAULT_BLOCK_B = 2048        # batch-tile target; clamped by B, megacore split & VMEM
_VMEM_HEADROOM = 2 << 20      # compiler scratch / semaphore headroom
_VMEM_FRACTION = 0.8          # never plan above 80% of physical VMEM


def _round_up(x, m):
    return ((x + m - 1) // m) * m


def _vmem_capacity_bytes():
    # Generation-aware cap (v7x has only 64 MiB per TC vs 128 MiB on v5e/v6e).
    try:
        return int(pltpu.get_tpu_info().vmem_capacity_bytes)
    except Exception:
        return 64 * 1024 * 1024   # conservative fallback (v7x per-TC)


def mlp_kernel(x_ref, w1_ref, b1_ref, w2_ref, b2_ref, w3_ref, b3_ref, o_ref):
    # One batch tile per grid step; weights/biases use constant block indices
    # so only x/out tiles move HBM<->VMEM per step.
    x = x_ref[...]

    # Layer 1: Linear(input_size -> 64) + ReLU (f32 accumulation on the MXU).
    h = jnp.dot(x, w1_ref[...], preferred_element_type=jnp.float32) + b1_ref[...]
    h = jnp.maximum(h, 0.0)

    # Layer 2: Linear(64 -> 64) + ReLU.
    h = jnp.dot(h.astype(w2_ref.dtype), w2_ref[...],
                preferred_element_type=jnp.float32) + b2_ref[...]
    h = jnp.maximum(h, 0.0)

    # Output layer: Linear(64 -> output_size), no activation.
    out = jnp.dot(h.astype(w3_ref.dtype), w3_ref[...],
                  preferred_element_type=jnp.float32) + b3_ref[...]
    o_ref[...] = out.astype(o_ref.dtype)


def network_forward(x, params, *, compute_dtype=jnp.bfloat16, out_dtype=None,
                    block_b=None):
    """Forward pass of `Network`.

    x: (B, input_size). params: dict w1,b1,w2,b2,w3,b3 (weights stored (in,out)).
    compute_dtype: dtype for x / weight matmul operands (bf16 default — the
                   MXU-native path on all generations); biases and
                   accumulation stay f32.
    out_dtype:     output dtype; defaults to compute_dtype.
    block_b:       batch tile size override (for testing / tuning).
    """
    w1, b1 = params["w1"], params["b1"]
    w2, b2 = params["w2"], params["b2"]
    w3, b3 = params["w3"], params["b3"]

    B, input_size = x.shape
    out_size = w3.shape[1]
    if out_dtype is None:
        out_dtype = compute_dtype

    # Cast matmul operands; keep biases (and accumulation) in f32.
    x_c = x.astype(compute_dtype)
    w1c, w2c, w3c = (w.astype(compute_dtype) for w in (w1, w2, w3))
    b1f, b2f, b3f = (b.astype(jnp.float32) for b in (b1, b2, b3))

    in_itemsize = jnp.dtype(compute_dtype).itemsize
    out_itemsize = jnp.dtype(out_dtype).itemsize
    weight_bytes = sum(int(a.size) * a.dtype.itemsize
                       for a in (w1c, b1f, w2c, b2f, w3c, b3f))
    # Pallas double-buffers inputs even with a constant index_map.
    weight_vmem = 2 * weight_bytes

    # --- batch tile selection ------------------------------------------------
    tb = DEFAULT_BLOCK_B if block_b is None else int(block_b)
    tb = _round_up(max(tb, 8), 8)
    # Keep >=2 grid steps when the batch allows it, so the "parallel" batch
    # axis feeds both TensorCores on v7x (no-op on single-TC v5e/v6e).
    tb = min(tb, max(8, _round_up(pl.cdiv(B, 2), 8)))
    # Clamp against physical VMEM: double-buffered x/out tiles + resident
    # (double-buffered) weights + headroom must fit in ~80% of capacity.
    vmem_cap = _vmem_capacity_bytes()
    budget = int(_VMEM_FRACTION * vmem_cap) - weight_vmem - _VMEM_HEADROOM
    per_row = 2 * (input_size * in_itemsize + out_size * out_itemsize)
    tb_vmem_max = max(8, (budget // per_row) // 8 * 8)
    tb = min(tb, tb_vmem_max)

    # Partial last tile is masked by Pallas -> no host-side pad/slice copies.
    grid = (pl.cdiv(B, tb),)

    vmem_needed = (2 * tb * input_size * in_itemsize
                   + 2 * tb * out_size * out_itemsize
                   + weight_vmem + _VMEM_HEADROOM)
    vmem_limit = int(min(max(vmem_needed, 32 * 1024 * 1024),
                         int(0.9 * vmem_cap)))

    cost = pl.CostEstimate(
        flops=2 * B * (input_size * HIDDEN + HIDDEN * HIDDEN + HIDDEN * out_size),
        transcendentals=0,
        bytes_accessed=(B * input_size * in_itemsize
                        + B * out_size * out_itemsize
                        + weight_bytes),
    )

    resident = lambda a: pl.BlockSpec(a.shape, lambda i: (0,) * a.ndim)

    out = pl.pallas_call(
        mlp_kernel,
        out_shape=jax.ShapeDtypeStruct((B, out_size), out_dtype),
        grid=grid,
        in_specs=[
            pl.BlockSpec((tb, input_size), lambda i: (i, 0)),  # x: tiled over batch
            resident(w1c), resident(b1f),                      # weights/biases resident
            resident(w2c), resident(b2f),
            resident(w3c), resident(b3f),
        ],
        out_specs=pl.BlockSpec((tb, out_size), lambda i: (i, 0)),
        compiler_params=pltpu.CompilerParams(
            dimension_semantics=("parallel",),   # megacore sharding on v7x
            vmem_limit_bytes=vmem_limit,
        ),
        cost_estimate=cost,
    )(x_c, w1c, b1f, w2c, b2f, w3c, b3f)

    return out


def init_params(key, input_size, output_size):
    """Deterministic init mimicking nn.Linear's uniform(-1/sqrt(fan_in), 1/sqrt(fan_in))."""
    def linear(k, fan_in, fan_out):
        kw, kb = jax.random.split(k)
        bound = 1.0 / jnp.sqrt(fan_in)
        w = jax.random.uniform(kw, (fan_in, fan_out), jnp.float32, -bound, bound)
        b = jax.random.uniform(kb, (1, fan_out), jnp.float32, -bound, bound)
        return w, b

    k1, k2, k3 = jax.random.split(key, 3)
    w1, b1 = linear(k1, input_size, HIDDEN)
    w2, b2 = linear(k2, HIDDEN, HIDDEN)
    w3, b3 = linear(k3, HIDDEN, output_size)
    return {"w1": w1, "b1": b1, "w2": w2, "b2": b2, "w3": w3, "b3": b3}


def reference_forward(x, p, compute_dtype=jnp.float32):
    """Pure-JAX reference with matching operand dtypes / f32 accumulation."""
    c = lambda a: a.astype(compute_dtype)
    h = jnp.dot(c(x), c(p["w1"]), preferred_element_type=jnp.float32) + p["b1"]
    h = jnp.maximum(h, 0.0)
    h = jnp.dot(c(h), c(p["w2"]), preferred_element_type=jnp.float32) + p["b2"]
    h = jnp.maximum(h, 0.0)
    return jnp.dot(c(h), c(p["w3"]), preferred_element_type=jnp.float32) + p["b3"]


# TODO(synk): the module's Adam optimizer and MSELoss are training-side state,
# not part of forward(); they are intentionally not implemented here.

if __name__ == "__main__":
    input_size, output_size = 32, 4
    key = jax.random.PRNGKey(0)
    k_params, k_x1, k_x2 = jax.random.split(key, 3)
    params = init_params(k_params, input_size, output_size)

    # Case 1: default bf16 fast path (MXU-native on all generations), small
    # batch, single grid step.
    batch = 8
    x = jax.random.normal(k_x1, (batch, input_size), jnp.float32)
    out = network_forward(x, params)
    jax.block_until_ready(out)
    ref = reference_forward(x, params, compute_dtype=jnp.bfloat16)
    assert out.shape == (batch, output_size)
    assert jnp.allclose(out.astype(jnp.float32), ref.astype(jnp.float32),
                        atol=2e-2, rtol=2e-2), "bf16 mismatch vs JAX reference"

    # Case 2: f32 path, batch not a multiple of the tile (exercises the
    # Pallas-masked partial last tile with no host-side padding) and a
    # multi-step pipelined grid.
    batch2 = 50
    x2 = jax.random.normal(k_x2, (batch2, input_size), jnp.float32)
    out2 = network_forward(x2, params, compute_dtype=jnp.float32,
                           out_dtype=jnp.float32, block_b=16)
    jax.block_until_ready(out2)
    ref2 = reference_forward(x2, params, compute_dtype=jnp.float32)
    assert out2.shape == (batch2, output_size)
    assert jnp.allclose(out2, ref2, atol=1e-5, rtol=1e-5), "f32 mismatch vs JAX reference"

    print("KERNEL_OK")
</pallas_src>

<mosaic_0001>
module attributes {stable_mosaic.version = 11 : i64} {
  func.func @mlp_kernel(%arg0: i32, %arg1: memref<8x32xbf16, #tpu.memory_space<vmem>>, %arg2: memref<32x64xbf16, #tpu.memory_space<vmem>>, %arg3: memref<1x64xf32, #tpu.memory_space<vmem>>, %arg4: memref<64x64xbf16, #tpu.memory_space<vmem>>, %arg5: memref<1x64xf32, #tpu.memory_space<vmem>>, %arg6: memref<64x4xbf16, #tpu.memory_space<vmem>>, %arg7: memref<1x4xf32, #tpu.memory_space<vmem>>, %arg8: memref<8x4xbf16, #tpu.memory_space<vmem>>) attributes {dimension_semantics = [#tpu.dimension_semantics<parallel>], iteration_bounds = array<i64: 1>, scalar_prefetch = 0 : i64, scratch_operands = 0 : i64, tpu.core_type = #tpu.core_type<tc>, window_params = [{transform_indices = @transform_0, window_bounds = array<i64: 8, 32>}, {pipeline_mode = #tpu.pipeline_mode<synchronous>, transform_indices = @transform_1, window_bounds = array<i64: 32, 64>}, {pipeline_mode = #tpu.pipeline_mode<synchronous>, transform_indices = @transform_2, window_bounds = array<i64: 1, 64>}, {pipeline_mode = #tpu.pipeline_mode<synchronous>, transform_indices = @transform_3, window_bounds = array<i64: 64, 64>}, {pipeline_mode = #tpu.pipeline_mode<synchronous>, transform_indices = @transform_4, window_bounds = array<i64: 1, 64>}, {pipeline_mode = #tpu.pipeline_mode<synchronous>, transform_indices = @transform_5, window_bounds = array<i64: 64, 4>}, {pipeline_mode = #tpu.pipeline_mode<synchronous>, transform_indices = @transform_6, window_bounds = array<i64: 1, 4>}, {transform_indices = @transform_7, window_bounds = array<i64: 8, 4>}]} {
    %c0 = arith.constant 0 : index
    %c0_0 = arith.constant 0 : index
    %0 = vector.load %arg1[%c0, %c0_0] : memref<8x32xbf16, #tpu.memory_space<vmem>>, vector<8x32xbf16>
    %c0_1 = arith.constant 0 : index
    %c0_2 = arith.constant 0 : index
    %1 = vector.load %arg2[%c0_1, %c0_2] : memref<32x64xbf16, #tpu.memory_space<vmem>>, vector<32x64xbf16>
    %cst = arith.constant dense<0.000000e+00> : vector<8x64xf32>
    %2 = tpu.matmul %0, %1, %cst {dimension_numbers = #tpu.dot_dimension_numbers<[1], [0], [0], [1], [0, 0, 1, 1], [], []>} : vector<8x32xbf16>, vector<32x64xbf16>, vector<8x64xf32> -> vector<8x64xf32>
    %c0_3 = arith.constant 0 : index
    %c0_4 = arith.constant 0 : index
    %3 = vector.load %arg3[%c0_3, %c0_4] : memref<1x64xf32, #tpu.memory_space<vmem>>, vector<1x64xf32>
    %4 = vector.broadcast %3 : vector<1x64xf32> to vector<8x64xf32>
    %5 = arith.addf %2, %4 : vector<8x64xf32>
    %cst_5 = arith.constant 0.000000e+00 : f32
    %6 = vector.broadcast %cst_5 : f32 to vector<8x64xf32>
    %7 = arith.maximumf %5, %6 : vector<8x64xf32>
    %8 = arith.truncf %7 : vector<8x64xf32> to vector<8x64xbf16>
    %c0_6 = arith.constant 0 : index
    %c0_7 = arith.constant 0 : index
    %9 = vector.load %arg4[%c0_6, %c0_7] : memref<64x64xbf16, #tpu.memory_space<vmem>>, vector<64x64xbf16>
    %cst_8 = arith.constant dense<0.000000e+00> : vector<8x64xf32>
    %10 = tpu.matmul %8, %9, %cst_8 {dimension_numbers = #tpu.dot_dimension_numbers<[1], [0], [0], [1], [0, 0, 1, 1], [], []>} : vector<8x64xbf16>, vector<64x64xbf16>, vector<8x64xf32> -> vector<8x64xf32>
    %c0_9 = arith.constant 0 : index
    %c0_10 = arith.constant 0 : index
    %11 = vector.load %arg5[%c0_9, %c0_10] : memref<1x64xf32, #tpu.memory_space<vmem>>, vector<1x64xf32>
    %12 = vector.broadcast %11 : vector<1x64xf32> to vector<8x64xf32>
    %13 = arith.addf %10, %12 : vector<8x64xf32>
    %cst_11 = arith.constant 0.000000e+00 : f32
    %14 = vector.broadcast %cst_11 : f32 to vector<8x64xf32>
    %15 = arith.maximumf %13, %14 : vector<8x64xf32>
    %16 = arith.truncf %15 : vector<8x64xf32> to vector<8x64xbf16>
    %c0_12 = arith.constant 0 : index
    %c0_13 = arith.constant 0 : index
    %17 = vector.load %arg6[%c0_12, %c0_13] : memref<64x4xbf16, #tpu.memory_space<vmem>>, vector<64x4xbf16>
    %cst_14 = arith.constant dense<0.000000e+00> : vector<8x4xf32>
    %18 = tpu.matmul %16, %17, %cst_14 {dimension_numbers = #tpu.dot_dimension_numbers<[1], [0], [0], [1], [0, 0, 1, 1], [], []>} : vector<8x64xbf16>, vector<64x4xbf16>, vector<8x4xf32> -> vector<8x4xf32>
    %c0_15 = arith.constant 0 : index
    %c0_16 = arith.constant 0 : index
    %19 = vector.load %arg7[%c0_15, %c0_16] : memref<1x4xf32, #tpu.memory_space<vmem>>, vector<1x4xf32>
    %20 = vector.broadcast %19 : vector<1x4xf32> to vector<8x4xf32>
    %21 = arith.addf %18, %20 : vector<8x4xf32>
    %22 = arith.truncf %21 : vector<8x4xf32> to vector<8x4xbf16>
    %c0_17 = arith.constant 0 : index
    %c0_18 = arith.constant 0 : index
    %23 = vector.load %arg8[%c0_17, %c0_18] : memref<8x4xbf16, #tpu.memory_space<vmem>>, vector<8x4xbf16>
    tpu.vector_store %arg8[%c0_17, %c0_18], %22 {strides = array<i32>} : memref<8x4xbf16, #tpu.memory_space<vmem>>, vector<8x4xbf16>,
    return
  }
  func.func @transform_0(%arg0: i32) -> (i32, i32) {
    %c0_i32 = arith.constant 0 : i32
    %c0_i32_0 = arith.constant 0 : i32
    return %arg0, %c0_i32 : i32, i32
  }
  func.func @transform_1(%arg0: i32) -> (i32, i32) {
    %c0_i32 = arith.constant 0 : i32
    %c0_i32_0 = arith.constant 0 : i32
    %c0_i32_1 = arith.constant 0 : i32
    return %c0_i32, %c0_i32_0 : i32, i32
  }
  func.func @transform_2(%arg0: i32) -> (i32, i32) {
    %c0_i32 = arith.constant 0 : i32
    %c0_i32_0 = arith.constant 0 : i32
    %c0_i32_1 = arith.constant 0 : i32
    return %c0_i32, %c0_i32_0 : i32, i32
  }
  func.func @transform_3(%arg0: i32) -> (i32, i32) {
    %c0_i32 = arith.constant 0 : i32
    %c0_i32_0 = arith.constant 0 : i32
    %c0_i32_1 = arith.constant 0 : i32
    return %c0_i32, %c0_i32_0 : i32, i32
  }
  func.func @transform_4(%arg0: i32) -> (i32, i32) {
    %c0_i32 = arith.constant 0 : i32
    %c0_i32_0 = arith.constant 0 : i32
    %c0_i32_1 = arith.constant 0 : i32
    return %c0_i32, %c0_i32_0 : i32, i32
  }
  func.func @transform_5(%arg0: i32) -> (i32, i32) {
    %c0_i32 = arith.constant 0 : i32
    %c0_i32_0 = arith.constant 0 : i32
    %c0_i32_1 = arith.constant 0 : i32
    return %c0_i32, %c0_i32_0 : i32, i32
  }
  func.func @transform_6(%arg0: i32) -> (i32, i32) {
    %c0_i32 = arith.constant 0 : i32
    %c0_i32_0 = arith.constant 0 : i32
    %c0_i32_1 = arith.constant 0 : i32
    return %c0_i32, %c0_i32_0 : i32, i32
  }
  func.func @transform_7(%arg0: i32) -> (i32, i32) {
    %c0_i32 = arith.constant 0 : i32
    %c0_i32_0 = arith.constant 0 : i32
    return %arg0, %c0_i32 : i32, i32
  }
}

</mosaic_0001>

<bundles_post_ra>
// kernel: tpu_custom_call.1
= control target key start
LH: loop header
LB: loop body
LE: loop exit
PB: predicated region body
PF: predicated region fallthrough
CT: control target
= control target key end

     0   :  { %12 = vsyncpa [#allocation3], 0  ;;  %s386_s24 = smov [#allocation2]   ;;  %s487_s0 = inlined_call_operand.vmem [shape: bf16[8,32], index: 0, kind: input, shape index: {}]   ;;  %s488_s1 = inlined_call_operand.hbm [shape: bf16[32,64], index: 1, kind: input, shape index: {}]   ;;  %s489_s2 = inlined_call_operand.vmem [shape: f32[1,64], index: 2, kind: input, shape index: {}]   ;;  %s490_s3 = inlined_call_operand.vmem [shape: bf16[64,64], index: 3, kind: input, shape index: {}]   ;;  %s491_s4 = inlined_call_operand.vmem [shape: f32[1,64], index: 4, kind: input, shape index: {}]   ;;  %s492_s5 = inlined_call_operand.vmem [shape: bf16[64,4], index: 5, kind: input, shape index: {}]   ;;  %s493_s6 = inlined_call_operand.vmem [shape: f32[1,4], index: 6, kind: input, shape index: {}]   ;;  %s494_s7 = inlined_call_operand.vmem [shape: bf16[8,4], index: 7, kind: output, shape index: {}]  }
   0x1   :  { %s20_s25 = sshll.u32 %s386_s24, 4  ;;  %s362_s28 = scalar_lea.hbm %s488_s1, 256  ;;  %s21_s25 = int_to_ptr.vmem [resolvable:$true] %s20_s25 }
   0x2   :  { %p363_p0 = scmp.ne.s32.totalorder %s488_s1, %s362_s28  ;;  %p366_p1 = scmp.lt.u32.totalorder %s362_s28, %s488_s1 }
   0x4   :  { %p368_p2 = pnand %p366_p1, %p363_p0 }
   0x6   :  { %371 = shalt.err (!%p368_p2)
}
   0x7   :  { %s372_s10 = scalar_lea.vmem %s21_s25, 256  ;;  %p377_p4 = scmp.lt.s32.totalorder %s21_s25, %s21_s25 }
   0x8   :  { %p373_p3 = scmp.ne.s32.totalorder %s21_s25, %s372_s10  ;;  %p378_p5 = scmp.lt.s32.totalorder %s372_s10, %s372_s10 }
   0xa   :  { %p379_p6 = por %p378_p5, %p377_p4 }
   0xc   :  { %p380_p7 = pnand %p379_p6, %p373_p3 }
   0xe   :  { %383 = shalt.err (!%p380_p7)
}
   0xf   :  { %s387_s11 = smov 64   ;;  %s388_s12 = smov 4  }
  0x10   :  { %26 = dma.hbm_to_vmem [thread:$0]  %s488_s1, 256, %s21_s25, [#allocation3], %s387_s11, %s387_s11, %s388_s12  }
  0x11   :  { %384 = dma.done.wait [#allocation3], 256  }
  0x12   :  { %385 = vsyncadd [#allocation3], 4294967040  ;;  %v389_v0 = vmov 0.0   ;;  %vm390_vm0 = vmmov 0   ;;  %v352_v1 = vld [vmem:[#allocation2] sm:$0xff]   ;;  %v353_v2 = vld [vmem:[#allocation2 + $0x8] sm:$0xff]  }
  0x13   :  { %315 = vmatprep.subr.bf16.mxu0 %v389_v0  ;;  %319 = vmatprep.mubr.msk.bf16.mxu0 %vm390_vm0, %v389_v0  ;;  %v354_v3 = vld [vmem:[%s490_s3] sm:$0xff]   ;;  %vm65_vm1 = vcmask 261120   ;;  %v355_v5 = vld [vmem:[%s490_s3 + $0x8] sm:$0xff]   ;;  %v356_v6 = vld [vmem:[%s490_s3 + $0x10] sm:$0xff]   ;;  %vm150_vm2 = vcmask 523264   ;;  %vm279_vm3 = vcmask 27648  }
  0x14   :  { %323 = vmatprep.subr.bf16.mxu1 %v389_v0  ;;  %331 = vmatprep.mubr.msk.bf16.mxu1 %vm390_vm0, %v389_v0  ;;  %v41_v4 = vld [vmem:[%s487_s0] sm:$0xf]  ;;  %v357_v7 = vld [vmem:[%s490_s3 + $0x18] sm:$0xff]   ;;  %v359_v9 = vld [vmem:[%s492_s5 + $0x8] sm:$0xff]  }
  0x15   :  { %316 = vmatpush3.bf16.msra.mxu0 %v352_v1  ;;  %324 = vmatpush3.bf16.msra.mxu1 %v354_v3  ;;  %v358_v8 = vld [vmem:[%s492_s5] sm:$0xff]   ;;  %v360_v18 = vld [vmem:[%s492_s5 + $0x10] sm:$0xff]   ;;  %v361_v19 = vld [vmem:[%s492_s5 + $0x18] sm:$0xff]  }
  0x16   :  { %317 = vmatprep.subr.bf16.mxu0 %v389_v0  ;;  %325 = vmatprep.subr.bf16.mxu1 %v389_v0  ;;  %v286_v10 = vld [vmem:[%s489_s2] ss:$0 sm:$0xff] }
  0x17   :  { %v290_v20 = vld [vmem:[%s491_s4] ss:$0 sm:$0xff] }
  0x18   :  { %v296_v28 = vld [vmem:[%s493_s6] ss:$0 sm:$0xff] }
  0x19   :  { %318 = vmatpush3.bf16.msra.mxu0 %v353_v2  ;;  %326 = vmatpush3.bf16.msra.mxu1 %v355_v5 }
  0x1a   :  { %335 = vmatprep.subr.bf16.mxu0 %v389_v0  ;;  %327 = vmatprep.subr.bf16.mxu1 %v389_v0 }
  0x1c   :  { %320 = vmatmul.mubr.msk.bf16.vlgmr.msra.gmra.mrb[0].mxu0 %vm65_vm1, %v41_v4 }
  0x1d   :  { %343 = vmatprep.mubr.msk.bf16.mxu0 %vm390_vm0, %v389_v0  ;;  %328 = vmatpush3.bf16.msra.mxu1 %v356_v6 }
  0x1e   :  { %329 = vmatprep.subr.bf16.mxu1 %v389_v0  ;;  %336 = vmatpush3.bf16.msra.mxu0 %v358_v8 }
  0x1f   :  { %337 = vmatprep.subr.bf16.mxu0 %v389_v0 }
  0x21   :  { %330 = vmatpush3.bf16.msra.mxu1 %v357_v7 }
  0x22   :  { %338 = vmatpush3.bf16.msra.mxu0 %v359_v9 }
  0x23   :  { %339 = vmatprep.subr.bf16.mxu0 %v389_v0 }
  0x26   :  { %340 = vmatpush3.bf16.msra.mxu0 %v360_v18 }
  0x27   :  { %341 = vmatprep.subr.bf16.mxu0 %v389_v0 }
  0x2a   :  { %342 = vmatpush3.bf16.msra.mxu0 %v361_v19 }
  0xef   :  { %v103_v11 = vpop.f32.mrb[0].mxu0 }
  0xf0   :  { %v104_v12 = vadd.f32 %v286_v10, %v103_v11  ;;  %v321_v13 = vpop.f32.mrb[1].mxu0 }
  0xf1   :  { %v106_v14 = vpop.f32.mrb[2].mxu0 }
  0xf2   :  { %v109_v15 = vmax.f32 %v104_v12, 0.0  ;;  %v322_v16 = vpop.f32.mrb[3].mxu0 }
  0xf4   :  { %v110_v17 = vpack.c.bf16 %v109_v15, %v109_v15 }
  0xf6   :  { %332 = vmatmul.mubr.msk.bf16.vlgmr.msra.gmra.mrb[0].mxu1 %vm150_vm2, %v110_v17 }
 0x1c9   :  { %v188_v21 = vpop.f32.mrb[0].mxu1 }
 0x1ca   :  { %v189_v22 = vadd.f32 %v290_v20, %v188_v21  ;;  %v333_v23 = vpop.f32.mrb[1].mxu1 }
 0x1cb   :  { %v191_v24 = vpop.f32.mrb[2].mxu1 }
 0x1cc   :  { %v194_v25 = vmax.f32 %v189_v22, 0.0  ;;  %v334_v26 = vpop.f32.mrb[3].mxu1 }
 0x1ce   :  { %v195_v27 = vpack.c.bf16 %v194_v25, %v194_v25 }
 0x1d0   :  { %344 = vmatmul.mubr.msk.bf16.vlgmr.msra.gmra.mrb[4].mxu0 %vm150_vm2, %v195_v27 }
 0x2a3   :  { %v272_v29 = vpop.f32.mrb[4].mxu0 }
 0x2a4   :  { %v273_v30 = vadd.f32 %v296_v28, %v272_v29  ;;  %v345_v31 = vpop.f32.mrb[5].mxu0 }
 0x2a5   :  { %v275_v32 = vpop.f32.mrb[6].mxu0 }
 0x2a6   :  { %v278_v33 = vpack.c.bf16 %v273_v30, %v273_v30  ;;  %v346_v34 = vpop.f32.mrb[7].mxu0 }
 0x2a8   :  { %280 = vst.msk [vmem:[%s494_s7] sm:$0xf] %vm279_vm3, %v278_v33 }
 0x2a9   :  { %285 = vsyncpa [#allocation3], 1 }

</bundles_post_ra>
